<compile_context>
chip_gen: v7x
topology: tpu7x:2x2x1
jax: 0.10.0
libtpu: 0.0.40
codegen_flags: <defaults>
</compile_context>

<pallas_src>
import functools

import jax
import jax.numpy as jnp
from jax.experimental import pallas as pl
from jax.experimental.pallas import tpu as pltpu


def _round_up(x, m):
    return ((x + m - 1) // m) * m


# ----------------------------------------------------------------------------
# Pallas kernel: kh-concat in VMEM -> one MXU matmul -> folded BN/bias + ReLU
# ----------------------------------------------------------------------------
def _convbnrelu_kernel(x_ref, w_ref, shift_ref, o_ref, *, kh, row_pitch, m_rows):
    """One (image, output-row tile) per grid step.

    x_ref     : (1, R, kw*cin)     bf16  kw-folded, row-flattened padded image
                                          (resident across row tiles of an image)
    w_ref     : (kh*kw*cin, cout)  bf16  BN-scale-folded conv weights
    shift_ref : (1, cout)          f32   folded BN shift (+ conv bias)
    o_ref     : (1, m_rows, cout)  bf16  dense output rows for this tile
    """
    t = pl.program_id(1)
    base = t * m_rows                                     # m_rows % 8 == 0
    taps = []
    for i in range(kh):                                   # static unroll (kh small)
        start = pl.multiple_of(base + i * row_pitch, 8)   # row_pitch % 8 == 0
        taps.append(x_ref[0, pl.ds(start, m_rows), :])    # (m_rows, kw*cin) bf16
    # Complete the im2col in VMEM: one K = kh*kw*cin matmul on the MXU.
    x_cat = jnp.concatenate(taps, axis=-1)                # (m_rows, kh*kw*cin)
    acc = jnp.dot(x_cat, w_ref[...],
                  preferred_element_type=jnp.float32)     # (m_rows, cout) f32
    # Folded-BN epilogue in f32 (v5e-safe): relu(acc + shift), cast on store.
    y = jnp.maximum(acc + shift_ref[...], 0.0)
    o_ref[0] = y.astype(o_ref.dtype)


# ----------------------------------------------------------------------------
# Wrapper: layout glue + BN folding + pallas_call
# ----------------------------------------------------------------------------
@functools.partial(jax.jit, static_argnames=("stride", "padding"))
def conv_bn_relu(x_nchw, weight, bias, gamma, beta, running_mean, running_var,
                 *, stride, padding, eps=1e-5):
    """Forward pass matching ConvBNReLU(x) with BN in eval mode.

    x_nchw : (N, Cin, H, W) f32, weight : (Cout, Cin, KH, KW), bias/BN params: (Cout,)
    returns: (N, Cout, OH, OW) f32
    """
    n, cin, h, w = x_nchw.shape
    cout, _, kh, kw = weight.shape

    hp, wp = h + 2 * padding, w + 2 * padding
    oh = (hp - kh) // stride + 1
    ow = (wp - kw) // stride + 1

    kwc = kw * cin                       # kw folded into channels
    kcat = kh * kwc                      # full matmul contraction depth
    owp = _round_up(ow, 8)               # sublane-aligned row pitch
    oh_dense = hp - kh + 1               # dense output-row positions computed

    # Output-row tile: target a few hundred flat rows per grid step.
    toh = max(1, min(oh_dense, 512 // owp))
    n_tiles = (oh_dense + toh - 1) // toh
    m_rows = toh * owp
    r_rows = max(hp * owp, (n_tiles * toh + kh - 1) * owp)   # multiple of 8

    # ---- fold BN (eval) + conv bias into weight / shift ---------------------
    scale = gamma * jax.lax.rsqrt(running_var + eps)              # (Cout,)
    shift = beta + (bias - running_mean) * scale                  # (Cout,)
    w_cat = jnp.transpose(weight, (2, 3, 1, 0)).reshape(kcat, cout)
    w_cat = (w_cat * scale[None, :]).astype(jnp.bfloat16)
    shift = shift.reshape(1, cout).astype(jnp.float32)

    # ---- input: NCHW -> NHWC, pad, fold kw (+ column stride) into channels --
    x_nhwc = jnp.transpose(x_nchw, (0, 2, 3, 1)).astype(jnp.bfloat16)
    xp = jnp.pad(x_nhwc, ((0, 0), (padding, padding), (padding, padding), (0, 0)))
    cols = [xp[:, :, j:j + (ow - 1) * stride + 1:stride, :] for j in range(kw)]
    x_aug = jnp.concatenate(cols, axis=-1)                   # (N, HP, OW, kw*cin)
    x_aug = jnp.pad(x_aug, ((0, 0), (0, 0), (0, owp - ow), (0, 0)))
    x_flat = x_aug.reshape(n, hp * owp, kwc)
    x_flat = jnp.pad(x_flat, ((0, 0), (0, r_rows - hp * owp), (0, 0)))

    # ---- generation-safe VMEM budget derived from actual block bytes --------
    need = (2 * (r_rows * kwc * 2 + m_rows * cout * 2)     # double-buffered in/out
            + kcat * cout * 2 + cout * 4                   # weights + shift
            + m_rows * (kcat * 2 + cout * 4))              # x_cat + f32 result
    vmem_limit = int(min(max(4 * need, 16 * 1024 * 1024), 48 * 1024 * 1024))

    out_flat = pl.pallas_call(
        functools.partial(_convbnrelu_kernel,
                          kh=kh, row_pitch=owp, m_rows=m_rows),
        out_shape=jax.ShapeDtypeStruct((n, n_tiles * m_rows, cout), jnp.bfloat16),
        grid_spec=pltpu.PrefetchScalarGridSpec(
            num_scalar_prefetch=0,
            grid=(n, n_tiles),
            in_specs=[
                pl.BlockSpec((1, r_rows, kwc), lambda b, t: (b, 0, 0)),   # image
                pl.BlockSpec((kcat, cout), lambda b, t: (0, 0)),          # weights
                pl.BlockSpec((1, cout), lambda b, t: (0, 0)),             # shift
            ],
            out_specs=pl.BlockSpec((1, m_rows, cout), lambda b, t: (b, t, 0)),
        ),
        compiler_params=pltpu.CompilerParams(
            dimension_semantics=("parallel", "parallel"),
            vmem_limit_bytes=vmem_limit,
        ),
    )(x_flat, w_cat, shift)

    # ---- drop pad columns, keep strided rows, back to NCHW f32 --------------
    out = out_flat.reshape(n, n_tiles * toh, owp, cout)
    out = out[:, 0:(oh - 1) * stride + 1:stride, :ow, :]      # (N, OH, OW, Cout)
    return jnp.transpose(out, (0, 3, 1, 2)).astype(jnp.float32)


# ----------------------------------------------------------------------------
# Pure-JAX reference (for in-script correctness check)
# ----------------------------------------------------------------------------
def _reference(x_nchw, weight, bias, gamma, beta, rmean, rvar, *, stride, padding,
               eps=1e-5):
    y = jax.lax.conv_general_dilated(
        x_nchw, weight,
        window_strides=(stride, stride),
        padding=[(padding, padding), (padding, padding)],
        dimension_numbers=("NCHW", "OIHW", "NCHW"),
    )
    y = y + bias.reshape(1, -1, 1, 1)
    y = (y - rmean.reshape(1, -1, 1, 1)) / jnp.sqrt(rvar.reshape(1, -1, 1, 1) + eps)
    y = y * gamma.reshape(1, -1, 1, 1) + beta.reshape(1, -1, 1, 1)
    return jnp.maximum(y, 0.0)


if __name__ == "__main__":
    # ConvBNReLU(in_channels=4, out_channels=8, kernel_size=3, padding=1,
    #            stride=..., conv_bias=True)
    N, CIN, H, W = 2, 4, 16, 16
    COUT, K, PAD = 8, 3, 1

    key = jax.random.PRNGKey(0)
    kx, kw_, kb, kg, kbe, km, kv = jax.random.split(key, 7)

    x = jax.random.normal(kx, (N, CIN, H, W), dtype=jnp.float32)
    weight = jax.random.normal(kw_, (COUT, CIN, K, K), dtype=jnp.float32) * 0.1
    bias = jax.random.normal(kb, (COUT,), dtype=jnp.float32) * 0.1
    gamma = 1.0 + 0.1 * jax.random.normal(kg, (COUT,), dtype=jnp.float32)
    beta = 0.1 * jax.random.normal(kbe, (COUT,), dtype=jnp.float32)
    running_mean = 0.1 * jax.random.normal(km, (COUT,), dtype=jnp.float32)
    running_var = 1.0 + 0.1 * jax.random.uniform(kv, (COUT,), dtype=jnp.float32)

    for stride in (1, 2):
        out = conv_bn_relu(x, weight, bias, gamma, beta, running_mean, running_var,
                           stride=stride, padding=PAD)
        out = jax.block_until_ready(out)
        ref = _reference(x, weight, bias, gamma, beta, running_mean, running_var,
                         stride=stride, padding=PAD)
        ohw = (H + 2 * PAD - K) // stride + 1
        assert out.shape == (N, COUT, ohw, ohw), out.shape
        # bf16 MXU operands + bf16 store (f32 accumulation) -> loosened tolerance.
        max_err = float(jnp.max(jnp.abs(out - ref)))
        assert jnp.allclose(out, ref, atol=3e-2, rtol=3e-2), max_err

    print("KERNEL_OK")
</pallas_src>

<mosaic_0001>
module attributes {stable_mosaic.version = 11 : i64} {
  func.func @_convbnrelu_kernel(%arg0: i32, %arg1: i32, %arg2: memref<1x288x12xbf16, #tpu.memory_space<vmem>>, %arg3: memref<36x8xbf16, #tpu.memory_space<vmem>>, %arg4: memref<1x8xf32, #tpu.memory_space<vmem>>, %arg5: memref<1x256x8xbf16, #tpu.memory_space<vmem>>) attributes {dimension_semantics = [#tpu.dimension_semantics<parallel>, #tpu.dimension_semantics<parallel>], iteration_bounds = array<i64: 2, 1>, scalar_prefetch = 0 : i64, scratch_operands = 0 : i64, tpu.core_type = #tpu.core_type<tc>, window_params = [{transform_indices = @transform_0, window_bounds = array<i64: 1, 288, 12>}, {pipeline_mode = #tpu.pipeline_mode<synchronous>, transform_indices = @transform_1, window_bounds = array<i64: 36, 8>}, {pipeline_mode = #tpu.pipeline_mode<synchronous>, transform_indices = @transform_2, window_bounds = array<i64: 1, 8>}, {transform_indices = @transform_3, window_bounds = array<i64: 1, 256, 8>}]} {
    %c256_i32 = arith.constant 256 : i32
    %0 = arith.muli %arg1, %c256_i32 : i32
    %c0_i32 = arith.constant 0 : i32
    %1 = arith.addi %0, %c0_i32 : i32
    %2 = tpu.assume_multiple %1, 8 : i32
    %c0 = arith.constant 0 : index
    %3 = arith.index_cast %2 : i32 to index
    %c0_0 = arith.constant 0 : index
    %4 = vector.load %arg2[%c0, %3, %c0_0] : memref<1x288x12xbf16, #tpu.memory_space<vmem>>, vector<1x256x12xbf16>
    %5 = vector.shape_cast %4 : vector<1x256x12xbf16> to vector<256x12xbf16>
    %c16_i32 = arith.constant 16 : i32
    %6 = arith.addi %0, %c16_i32 : i32
    %7 = tpu.assume_multiple %6, 8 : i32
    %c0_1 = arith.constant 0 : index
    %8 = arith.index_cast %7 : i32 to index
    %c0_2 = arith.constant 0 : index
    %9 = vector.load %arg2[%c0_1, %8, %c0_2] : memref<1x288x12xbf16, #tpu.memory_space<vmem>>, vector<1x256x12xbf16>
    %10 = vector.shape_cast %9 : vector<1x256x12xbf16> to vector<256x12xbf16>
    %c32_i32 = arith.constant 32 : i32
    %11 = arith.addi %0, %c32_i32 : i32
    %12 = tpu.assume_multiple %11, 8 : i32
    %c0_3 = arith.constant 0 : index
    %13 = arith.index_cast %12 : i32 to index
    %c0_4 = arith.constant 0 : index
    %14 = vector.load %arg2[%c0_3, %13, %c0_4] : memref<1x288x12xbf16, #tpu.memory_space<vmem>>, vector<1x256x12xbf16>
    %15 = vector.shape_cast %14 : vector<1x256x12xbf16> to vector<256x12xbf16>
    %16 = tpu.concatenate %5, %10, %15 in 1 : vector<256x12xbf16>, vector<256x12xbf16>, vector<256x12xbf16> -> vector<256x36xbf16>
    %c0_5 = arith.constant 0 : index
    %c0_6 = arith.constant 0 : index
    %17 = vector.load %arg3[%c0_5, %c0_6] : memref<36x8xbf16, #tpu.memory_space<vmem>>, vector<36x8xbf16>
    %cst = arith.constant dense<0.000000e+00> : vector<256x8xf32>
    %18 = tpu.matmul %16, %17, %cst {dimension_numbers = #tpu.dot_dimension_numbers<[1], [0], [0], [1], [0, 0, 1, 1], [], []>} : vector<256x36xbf16>, vector<36x8xbf16>, vector<256x8xf32> -> vector<256x8xf32>
    %c0_7 = arith.constant 0 : index
    %c0_8 = arith.constant 0 : index
    %19 = vector.load %arg4[%c0_7, %c0_8] : memref<1x8xf32, #tpu.memory_space<vmem>>, vector<1x8xf32>
    %20 = vector.broadcast %19 : vector<1x8xf32> to vector<256x8xf32>
    %21 = arith.addf %18, %20 : vector<256x8xf32>
    %cst_9 = arith.constant 0.000000e+00 : f32
    %22 = vector.broadcast %cst_9 : f32 to vector<256x8xf32>
    %23 = arith.maximumf %21, %22 : vector<256x8xf32>
    %24 = arith.truncf %23 : vector<256x8xf32> to vector<256x8xbf16>
    %c0_10 = arith.constant 0 : index
    %c0_11 = arith.constant 0 : index
    %c0_12 = arith.constant 0 : index
    %25 = vector.load %arg5[%c0_10, %c0_11, %c0_12] : memref<1x256x8xbf16, #tpu.memory_space<vmem>>, vector<1x256x8xbf16>
    %26 = vector.shape_cast %25 : vector<1x256x8xbf16> to vector<256x8xbf16>
    %27 = vector.shape_cast %24 : vector<256x8xbf16> to vector<1x256x8xbf16>
    tpu.vector_store %arg5[%c0_10, %c0_11, %c0_12], %27 {strides = array<i32>} : memref<1x256x8xbf16, #tpu.memory_space<vmem>>, vector<1x256x8xbf16>,
    return
  }
  func.func @transform_0(%arg0: i32, %arg1: i32) -> (i32, i32, i32) {
    %c0_i32 = arith.constant 0 : i32
    %c0_i32_0 = arith.constant 0 : i32
    %c0_i32_1 = arith.constant 0 : i32
    return %arg0, %c0_i32, %c0_i32_0 : i32, i32, i32
  }
  func.func @transform_1(%arg0: i32, %arg1: i32) -> (i32, i32) {
    %c0_i32 = arith.constant 0 : i32
    %c0_i32_0 = arith.constant 0 : i32
    %c0_i32_1 = arith.constant 0 : i32
    return %c0_i32, %c0_i32_0 : i32, i32
  }
  func.func @transform_2(%arg0: i32, %arg1: i32) -> (i32, i32) {
    %c0_i32 = arith.constant 0 : i32
    %c0_i32_0 = arith.constant 0 : i32
    %c0_i32_1 = arith.constant 0 : i32
    return %c0_i32, %c0_i32_0 : i32, i32
  }
  func.func @transform_3(%arg0: i32, %arg1: i32) -> (i32, i32, i32) {
    %c0_i32 = arith.constant 0 : i32
    %c0_i32_0 = arith.constant 0 : i32
    return %arg0, %arg1, %c0_i32 : i32, i32, i32
  }
}

</mosaic_0001>

<bundles_post_ra>
// kernel: conv_bn_relu.1
= control target key start
LH: loop header
LB: loop body
LE: loop exit
PB: predicated region body
PF: predicated region fallthrough
CT: control target
= control target key end

     0   :  { %s1593_s12 = smov 0   ;;  %s1595_s13 = smov 0   ;;  %s1872_s0 = inlined_call_operand.vmem [shape: bf16[2,288,12], index: 0, kind: input, shape index: {}]   ;;  %s1873_s1 = inlined_call_operand.vmem [shape: bf16[36,8], index: 1, kind: input, shape index: {}]   ;;  %s1874_s2 = inlined_call_operand.vmem [shape: f32[1,8], index: 2, kind: input, shape index: {}]   ;;  %s1875_s3 = inlined_call_operand.vmem [shape: bf16[2,256,8], index: 3, kind: output, shape index: {}]  }
   0x1   :  { %s1597_s14 = smov 0  }
   0x2 LB: > { %s25_s15 = sadd.s32 1, %s1565_s13  ;;  %p1201_p0 = scmp.ge.s32.totalorder %s1569_s14, 1  ;;  %s1569_s14 = sphi %s1597_s14, %s13_s14   ;;  %s1565_s13 = sphi %s1595_s13, %s1877_s13   ;;  %s1561_s12 = sphi %s1593_s12, %s1876_s12  }
   0x3   : > { %p27_p1 = scmp.ge.s32.totalorder %s25_s15, 2  ;;  %p151_p2 = scmp.lt.s32.totalorder %s1569_s14, 3 }
   0x5   : > { %s1879_s15 = smov (%p27_p1, %s25_s15), 0  ;;  %p152_p3 = pnand %p1201_p0, %p151_p2 }
   0x6   : > { %p179_p4 = scmp.lt.s32.totalorder (!%p152_p3), %s1561_s12, 1  ;;  %v1530_v0 = vld [vmem:[%s1873_s1] sm:$0xff] (!%p152_p3)   ;;  %v1533_v1 = vld [vmem:[%s1873_s1 + $0x8] sm:$0xff] (!%p152_p3)   ;;  %v1534_v2 = vld [vmem:[%s1873_s1 + $0x10] ss:$0 sps:$4 sm:$0x33] (!%p152_p3)  }
   0x7   : > { %155 = sbr.rel (%p152_p3) target bundleno = 417 (0x1a1), region = 32  ;;  %1423 = vmatprep.subr.bf16.mxu0 (!%p152_p3), %v1530_v0  ;;  %1461 = vmatprep.subr.bf16.mxu1 (!%p152_p3), %v1530_v0  ;;  %vm752_vm0 = vcmask (!%p152_p3), 1041408   ;;  %s1571_s26 = smov (!%p152_p3), 12   ;;  %vm610_vm1 = vcmask (!%p152_p3), 97280   ;;  %vm659_vm2 = vcmask (!%p152_p3), 195584   ;;  %vm719_vm3 = vcmask (!%p152_p3), 293888  }
   0x8   : > { %1424 = vmatpush3.bf16.msra.mxu0 (!%p152_p3), %v1530_v0  ;;  %1464 = vmatpush3.bf16.msra.mxu1 (!%p152_p3), %v1530_v0  ;;  %v754_v5 = vsel (!%p152_p3), %vm752_vm0, %v1534_v2, 0  ;;  %s1572_s27 = smov (!%p152_p3), 24   ;;  %vm1077_vm4 = vcmask (!%p152_p3), 60416  }
   0x9   : > { %1425 = vmatprep.subr.bf16.mxu0 (!%p152_p3), %v1533_v1  ;;  %1462 = vmatprep.subr.bf16.mxu1 (!%p152_p3), %v1533_v1 }
   0xc   : > { %1426 = vmatpush3.bf16.msra.mxu0 (!%p152_p3), %v1533_v1  ;;  %1465 = vmatpush3.bf16.msra.mxu1 (!%p152_p3), %v1533_v1 }
   0xd   : > { %1467 = vmatprep.subr.msk.bf16.mxu0 (!%p152_p3), %vm752_vm0, %v1534_v2  ;;  %1468 = vmatprep.subr.msk.bf16.mxu1 (!%p152_p3), %vm752_vm0, %v1534_v2 }
   0xe   : > { %s1881_s12 = smov (!%p179_p4, %s1561_s12), 1 }
   0xf   : > { %s1469_s20 = smul.u32 144, %s1881_s12  ;;  %s1371_s30 = sshll.u32 %s1881_s12, 7 }
  0x10   : > { %1428 = vmatpush3.bf16.msra.mxu0 %v754_v5  ;;  %1466 = vmatpush3.bf16.msra.mxu1 %v754_v5  ;;  %s1770_s6 = scalar_lea.vmem %s1875_s3, %s1371_s30 }
  0x11   : > { %s1626_s25 = scalar_lea.vmem %s1872_s0, %s1469_s20 }
  0x12   : > { %v1496_v3 = vld [vmem:[%s1626_s25 + $0x10] sm:$0xff]   ;;  %v1497_v4 = vld [vmem:[%s1626_s25 + $0x8] sm:$0xff]   ;;  %v1502_v10 = vld [vmem:[%s1626_s25 + $0x58] sm:$0xff]  }
  0x13   : > { %468 = vrot.lane.b32.xlu1 %v1496_v3, %s1571_s26  ;;  %v1498_v6 = vld [vmem:[%s1626_s25 + $0x50] sm:$0xff]   ;;  %466 = vrot.lane.b32.xlu0 %v1497_v4, %s1571_s26  ;;  %v1499_v7 = vld [vmem:[%s1626_s25 + $0x48] sm:$0xff]  }
  0x14   : > { %v1500_v8 = vld [vmem:[%s1626_s25 + $0x50] sm:$0xff]   ;;  %v1503_v11 = vld [vmem:[%s1626_s25 + $0x18] sm:$0xff]   ;;  %v1506_v14 = vld [vmem:[%s1626_s25 + $0x60] sm:$0xff]  }
  0x15   : > { %v1501_v9 = vld [vmem:[%s1626_s25 + $0x10] sm:$0xff]   ;;  %v1504_v12 = vld [vmem:[%s1626_s25 + $0x58] sm:$0xff]   ;;  %v1507_v15 = vld [vmem:[%s1626_s25 + $0x20] sm:$0xff]  }
  0x16   : > { %v1505_v13 = vld [vmem:[%s1626_s25 + $0x18] sm:$0xff]   ;;  %v1508_v16 = vld [vmem:[%s1626_s25 + $0x60] sm:$0xff]   ;;  %v1510_v18 = vld [vmem:[%s1626_s25 + $0x68] sm:$0xff]  }
  0x17   : > { %484 = vrot.lane.b32.xlu1 %v1498_v6, %s1571_s26  ;;  %482 = vrot.lane.b32.xlu0 %v1499_v7, %s1571_s26  ;;  %v1509_v17 = vld [vmem:[%s1626_s25 + $0x20] sm:$0xff]   ;;  %v1511_v19 = vld [vmem:[%s1626_s25 + $0x28] sm:$0xff]  }
  0x18   : > { %v1512_v20 = vld [vmem:[%s1626_s25 + $0x68] sm:$0xff]   ;;  %v1514_v22 = vld [vmem:[%s1626_s25 + $0x70] sm:$0xff]   ;;  %v1518_v26 = vld [vmem:[%s1626_s25 + $0x78] sm:$0xff]  }
  0x19   : > { %v1513_v21 = vld [vmem:[%s1626_s25 + $0x28] sm:$0xff]   ;;  %v1515_v23 = vld [vmem:[%s1626_s25 + $0x30] sm:$0xff]   ;;  %v1519_v27 = vld [vmem:[%s1626_s25 + $0x38] sm:$0xff]  }
  0x1a   : > { %v1516_v24 = vld [vmem:[%s1626_s25 + $0x70] sm:$0xff]   ;;  %v1520_v28 = vld [vmem:[%s1626_s25 + $0x78] sm:$0xff]   ;;  %v1522_v30 = vld [vmem:[%s1626_s25 + $0x80] sm:$0xff]  }
  0x1b   : > { %594 = vrot.lane.b32.xlu1 %v1500_v8, %s1572_s27  ;;  %578 = vrot.lane.b32.xlu0 %v1501_v9, %s1572_s27  ;;  %v1517_v25 = vld [vmem:[%s1626_s25 + $0x30] sm:$0xff]   ;;  %v1521_v29 = vld [vmem:[%s1626_s25 + $0x38] sm:$0xff]  }
  0x1c   : > { %v1523_v31 = vld [vmem:[%s1626_s25 + $0x40] sm:$0xff]   ;;  %v1526_v34 = vld [vmem:[%s1626_s25 + $0x88] sm:$0xff]   ;;  %v1535_v58 = vld [vmem:[%s1626_s25 + $0x50] sm:$0xff]  }
  0x1d   : > { %v1524_v32 = vld [vmem:[%s1626_s25 + $0x80] sm:$0xff]   ;;  %v1527_v35 = vld [vmem:[%s1626_s25 + $0x48] sm:$0xff]   ;;  %v1536_v60 = vld [vmem:[%s1626_s25 + $0x10] sm:$0xff]  }
  0x1e   : > { %v1525_v33 = vld [vmem:[%s1626_s25 + $0x40] sm:$0xff]   ;;  %v1531_v42 = vld [vmem:[%s1626_s25 + $0x48] sm:$0xff]   ;;  %v1537_v63 = vld [vmem:[%s1626_s25 + $0x58] sm:$0xff]  }
  0x1f   : > { %596 = vrot.lane.b32.xlu1 %v1502_v10, %s1572_s27  ;;  %580 = vrot.lane.b32.xlu0 %v1503_v11, %s1572_s27  ;;  %v1532_v39 = vld [vmem:[%s1626_s25 + $0x40] sm:$0xff]   ;;  %v1528_v45 = vld [vmem:[%s1626_s25 + $0x8] sm:$0xff]  }
  0x20   : > { %v1529_v40 = vld [vmem:[%s1626_s25] sm:$0xff]   ;;  %v1538_v2 = vld [vmem:[%s1626_s25 + $0x18] sm:$0xff]  }
  0x23   : > { %486 = vrot.lane.b32.xlu1 %v1504_v12, %s1571_s26  ;;  %470 = vrot.lane.b32.xlu0 %v1505_v13, %s1571_s26 }
  0x27   : > { %488 = vrot.lane.b32.xlu1 %v1506_v14, %s1571_s26  ;;  %472 = vrot.lane.b32.xlu0 %v1507_v15, %s1571_s26  ;;  %v1539_v14 = vld [vmem:[%s1626_s25 + $0x60] sm:$0xff]  }
  0x2b   : > { %598 = vrot.lane.b32.xlu1 %v1508_v16, %s1572_s27  ;;  %582 = vrot.lane.b32.xlu0 %v1509_v17, %s1572_s27  ;;  %v1540_v16 = vld [vmem:[%s1626_s25 + $0x20] sm:$0xff]  }
  0x2f   : > { %600 = vrot.lane.b32.xlu1 %v1510_v18, %s1572_s27  ;;  %584 = vrot.lane.b32.xlu0 %v1511_v19, %s1572_s27  ;;  %v1541_v19 = vld [vmem:[%s1626_s25 + $0x68] sm:$0xff]  }
  0x33   : > { %490 = vrot.lane.b32.xlu1 %v1512_v20, %s1571_s26  ;;  %474 = vrot.lane.b32.xlu0 %v1513_v21, %s1571_s26 }
  0x37   : > { %492 = vrot.lane.b32.xlu1 %v1514_v22, %s1571_s26  ;;  %476 = vrot.lane.b32.xlu0 %v1515_v23, %s1571_s26  ;;  %v1542_v22 = vld [vmem:[%s1626_s25 + $0x28] sm:$0xff]  }
  0x3b   : > { %602 = vrot.lane.b32.xlu1 %v1516_v24, %s1572_s27  ;;  %586 = vrot.lane.b32.xlu0 %v1517_v25, %s1572_s27 }
  0x3f   : > { %604 = vrot.lane.b32.xlu1 %v1518_v26, %s1572_s27  ;;  %588 = vrot.lane.b32.xlu0 %v1519_v27, %s1572_s27 }
  0x43   : > { %494 = vrot.lane.b32.xlu1 %v1520_v28, %s1571_s26  ;;  %478 = vrot.lane.b32.xlu0 %v1521_v29, %s1571_s26 }
  0x47   : > { %496 = vrot.lane.b32.xlu1 %v1522_v30, %s1571_s26  ;;  %480 = vrot.lane.b32.xlu0 %v1523_v31, %s1571_s26 }
  0x4b   : > { %606 = vrot.lane.b32.xlu1 %v1524_v32, %s1572_s27  ;;  %590 = vrot.lane.b32.xlu0 %v1525_v33, %s1572_s27 }
  0x4f   : > { %608 = vrot.lane.b32.xlu1 %v1526_v34, %s1572_s27  ;;  %592 = vrot.lane.b32.xlu0 %v1527_v35, %s1572_s27  ;;  %v1543_v34 = vld [vmem:[%s1626_s25 + $0x70] sm:$0xff]  }
  0x85   : > { %v469_v36 = vpop.permute.xlu1 %468  ;;  %v467_v37 = vpop.permute.xlu0 %466 }
  0x86   : > { %v613_v46 = vsel %vm610_vm1, %v1529_v40, %v467_v37  ;;  %v616_v52 = vsel %vm610_vm1, %v1528_v45, %v469_v36  ;;  %v1544_v36 = vld [vmem:[%s1626_s25 + $0x30] sm:$0xff]  }
  0x89   : > { %v485_v38 = vpop.permute.xlu1 %484  ;;  %v483_v41 = vpop.permute.xlu0 %482 }
  0x8a   : > { %v637_v43 = vsel %vm610_vm1, %v1532_v39, %v483_v41  ;;  %v640_v50 = vsel %vm610_vm1, %v1531_v42, %v485_v38  ;;  %v1545_v39 = vld [vmem:[%s1626_s25 + $0x78] sm:$0xff]  }
  0x8b   : > { %v1546_v42 = vld [vmem:[%s1626_s25 + $0x38] sm:$0xff]  }
  0x8d   : > { %v595_v44 = vpop.permute.xlu1 %594  ;;  %v579_v47 = vpop.permute.xlu0 %578 }
  0x8e   : > { %v677_v48 = vsel %vm659_vm2, %v637_v43, %v595_v44  ;;  %v661_v49 = vsel %vm659_vm2, %v613_v46, %v579_v47 }
  0x8f   : > { %1445 = vmatprep.mubr.msk.bf16.mxu1 %vm719_vm3, %v677_v48  ;;  %1429 = vmatprep.mubr.msk.bf16.mxu0 %vm719_vm3, %v661_v49 }
  0x91   : > { %v597_v51 = vpop.permute.xlu1 %596  ;;  %v581_v54 = vpop.permute.xlu0 %580 }
  0x92   : > { %v679_v53 = vsel %vm659_vm2, %v640_v50, %v597_v51  ;;  %v663_v55 = vsel %vm659_vm2, %v616_v52, %v581_v54  ;;  %v1759_v52 = vld [vmem:[%s1874_s2] ss:$0 sm:$0xff] }
  0x93   : > { %1446 = vmatmul.mubr.msk.bf16.vlgmr.msra.gmra.mrb[0].mxu1 %vm719_vm3, %v679_v53  ;;  %1430 = vmatmul.mubr.msk.bf16.vlgmr.msra.gmra.mrb[0].mxu0 %vm719_vm3, %v663_v55 }
  0x95   : > { %v487_v56 = vpop.permute.xlu1 %486  ;;  %v471_v57 = vpop.permute.xlu0 %470 }
  0x96   : > { %v643_v62 = vsel %vm610_vm1, %v1535_v58, %v487_v56  ;;  %v619_v1 = vsel %vm610_vm1, %v1536_v60, %v471_v57 }
  0x99   : > { %v489_v59 = vpop.permute.xlu1 %488  ;;  %v473_v61 = vpop.permute.xlu0 %472 }
  0x9a   : > { %v646_v6 = vsel %vm610_vm1, %v1537_v63, %v489_v59  ;;  %v622_v8 = vsel %vm610_vm1, %v1538_v2, %v473_v61 }
  0x9d   : > { %v599_v0 = vpop.permute.xlu1 %598  ;;  %v583_v4 = vpop.permute.xlu0 %582 }
  0x9e   : > { %v681_v3 = vsel %vm659_vm2, %v643_v62, %v599_v0  ;;  %v665_v5 = vsel %vm659_vm2, %v619_v1, %v583_v4 }
  0x9f   : > { %1449 = vmatprep.mubr.msk.bf16.mxu1 %vm719_vm3, %v681_v3  ;;  %1433 = vmatprep.mubr.msk.bf16.mxu0 %vm719_vm3, %v665_v5 }
  0xa1   : > { %v601_v7 = vpop.permute.xlu1 %600  ;;  %v585_v10 = vpop.permute.xlu0 %584 }
  0xa2   : > { %v683_v9 = vsel %vm659_vm2, %v646_v6, %v601_v7  ;;  %v667_v11 = vsel %vm659_vm2, %v622_v8, %v585_v10 }
  0xa3   : > { %1450 = vmatmul.mubr.msk.bf16.gmra.mrb[4].mxu1 %vm719_vm3, %v683_v9  ;;  %1434 = vmatmul.mubr.msk.bf16.gmra.mrb[4].mxu0 %vm719_vm3, %v667_v11 }
  0xa5   : > { %v491_v12 = vpop.permute.xlu1 %490  ;;  %v475_v13 = vpop.permute.xlu0 %474 }
  0xa6   : > { %v649_v18 = vsel %vm610_vm1, %v1539_v14, %v491_v12  ;;  %v625_v21 = vsel %vm610_vm1, %v1540_v16, %v475_v13 }
  0xa9   : > { %v493_v15 = vpop.permute.xlu1 %492  ;;  %v477_v17 = vpop.permute.xlu0 %476 }
  0xaa   : > { %v652_v26 = vsel %vm610_vm1, %v1541_v19, %v493_v15  ;;  %v628_v28 = vsel %vm610_vm1, %v1542_v22, %v477_v17 }
  0xad   : > { %v603_v20 = vpop.permute.xlu1 %602  ;;  %v587_v24 = vpop.permute.xlu0 %586 }
  0xae   : > { %v685_v23 = vsel %vm659_vm2, %v649_v18, %v603_v20  ;;  %v669_v25 = vsel %vm659_vm2, %v625_v21, %v587_v24 }
  0xaf   : > { %1453 = vmatprep.mubr.msk.bf16.mxu1 %vm719_vm3, %v685_v23  ;;  %1437 = vmatprep.mubr.msk.bf16.mxu0 %vm719_vm3, %v669_v25 }
  0xb1   : > { %v605_v27 = vpop.permute.xlu1 %604  ;;  %v589_v30 = vpop.permute.xlu0 %588 }
  0xb2   : > { %v687_v29 = vsel %vm659_vm2, %v652_v26, %v605_v27  ;;  %v671_v31 = vsel %vm659_vm2, %v628_v28, %v589_v30 }
  0xb3   : > { %1454 = vmatmul.mubr.msk.bf16.gmra.mrb[8].mxu1 %vm719_vm3, %v687_v29  ;;  %1438 = vmatmul.mubr.msk.bf16.gmra.mrb[8].mxu0 %vm719_vm3, %v671_v31 }
  0xb5   : > { %v495_v32 = vpop.permute.xlu1 %494  ;;  %v479_v33 = vpop.permute.xlu0 %478 }
  0xb6   : > { %v655_v38 = vsel %vm610_vm1, %v1543_v34, %v495_v32  ;;  %v631_v41 = vsel %vm610_vm1, %v1544_v36, %v479_v33 }
  0xb9   : > { %v497_v35 = vpop.permute.xlu1 %496  ;;  %v481_v37 = vpop.permute.xlu0 %480 }
  0xba   : > { %v658_v46 = vsel %vm610_vm1, %v1545_v39, %v497_v35  ;;  %v634_v48 = vsel %vm610_vm1, %v1546_v42, %v481_v37 }
  0xbd   : > { %v607_v40 = vpop.permute.xlu1 %606  ;;  %v591_v44 = vpop.permute.xlu0 %590 }
  0xbe   : > { %v689_v43 = vsel %vm659_vm2, %v655_v38, %v607_v40  ;;  %v673_v45 = vsel %vm659_vm2, %v631_v41, %v591_v44 }
  0xbf   : > { %1457 = vmatprep.mubr.msk.bf16.mxu1 %vm719_vm3, %v689_v43  ;;  %1441 = vmatprep.mubr.msk.bf16.mxu0 %vm719_vm3, %v673_v45 }
  0xc1   : > { %v609_v47 = vpop.permute.xlu1 %608  ;;  %v593_v50 = vpop.permute.xlu0 %592 }
  0xc2   : > { %v691_v49 = vsel %vm659_vm2, %v658_v46, %v609_v47  ;;  %v675_v51 = vsel %vm659_vm2, %v634_v48, %v593_v50 }
  0xc3   : > { %1458 = vmatmul.mubr.msk.bf16.gmra.mrb[12].mxu1 %vm719_vm3, %v691_v49  ;;  %1442 = vmatmul.mubr.msk.bf16.gmra.mrb[12].mxu0 %vm719_vm3, %v675_v51 }
 0x166   : > { %v1447_v53 = vpop.f32.mrb[0].mxu1  ;;  %v1431_v54 = vpop.f32.mrb[0].mxu0 }
 0x167   : > { %v863_v55 = vadd.f32 %v1447_v53, %v1759_v52  ;;  %v854_v56 = vpop.f32.mrb[1].mxu1  ;;  %v799_v57 = vadd.f32 %v1431_v54, %v1759_v52  ;;  %v790_v58 = vpop.f32.mrb[1].mxu0 }
 0x168   : > { %v855_v59 = vadd.f32 %v1759_v52, %v854_v56  ;;  %v1448_v60 = vpop.f32.mrb[2].mxu1  ;;  %v791_v62 = vadd.f32 %v1759_v52, %v790_v58  ;;  %v1432_v63 = vpop.f32.mrb[2].mxu0 }
 0x169   : > { %v935_v61 = vmax.f32 %v863_v55, 0.0  ;;  %v866_v0 = vadd.f32 %v1448_v60, %v1759_v52  ;;  %v857_v1 = vpop.f32.mrb[3].mxu1  ;;  %v919_v2 = vmax.f32 %v799_v57, 0.0  ;;  %v802_v4 = vadd.f32 %v1432_v63, %v1759_v52  ;;  %v793_v5 = vpop.f32.mrb[3].mxu0 }
 0x16a   : > { %v933_v3 = vmax.f32 %v855_v59, 0.0  ;;  %v858_v6 = vadd.f32 %v1759_v52, %v857_v1  ;;  %v917_v8 = vmax.f32 %v791_v62, 0.0  ;;  %v794_v10 = vadd.f32 %v1759_v52, %v793_v5 }
 0x16b   : > { %v1390_v7 = vpack.c.bf16 %v935_v61, %v935_v61  ;;  %v936_v9 = vmax.f32 %v866_v0, 0.0  ;;  %v1374_v11 = vpack.c.bf16 %v919_v2, %v919_v2  ;;  %v920_v13 = vmax.f32 %v802_v4, 0.0 }
 0x16c   : > { %v1388_v12 = vpack.c.bf16 %v933_v3, %v933_v3  ;;  %v934_v14 = vmax.f32 %v858_v6, 0.0  ;;  %v1372_v15 = vpack.c.bf16 %v917_v8, %v917_v8  ;;  %v918_v17 = vmax.f32 %v794_v10, 0.0 }
 0x16d   : > { %1096 = vst.msk [vmem:[%s1770_s6 + $0x48] sm:$0xf] %vm1077_vm4, %v1390_v7  ;;  %v1391_v16 = vpack.c.bf16 %v936_v9, %v936_v9  ;;  %1080 = vst.msk [vmem:[%s1770_s6 + $0x8] sm:$0xf] %vm1077_vm4, %v1374_v11  ;;  %v1375_v18 = vpack.c.bf16 %v920_v13, %v920_v13 }
 0x16e   : > { %1094 = vst.msk [vmem:[%s1770_s6 + $0x40] sm:$0xf] %vm1077_vm4, %v1388_v12  ;;  %v1389_v19 = vpack.c.bf16 %v934_v14, %v934_v14  ;;  %1078 = vst.msk [vmem:[%s1770_s6] sm:$0xf] %vm1077_vm4, %v1372_v15  ;;  %v1373_v20 = vpack.c.bf16 %v918_v17, %v918_v17 }
 0x16f   : > { %1097 = vst.msk [vmem:[%s1770_s6 + $0x4c] sm:$0xf] %vm1077_vm4, %v1391_v16  ;;  %1081 = vst.msk [vmem:[%s1770_s6 + $0xc] sm:$0xf] %vm1077_vm4, %v1375_v18 }
 0x170   : > { %1095 = vst.msk [vmem:[%s1770_s6 + $0x44] sm:$0xf] %vm1077_vm4, %v1389_v19  ;;  %1079 = vst.msk [vmem:[%s1770_s6 + $0x4] sm:$0xf] %vm1077_vm4, %v1373_v20 }
 0x176   : > { %v1451_v21 = vpop.f32.mrb[4].mxu1  ;;  %v1435_v22 = vpop.f32.mrb[4].mxu0 }
 0x177   : > { %v879_v23 = vadd.f32 %v1451_v21, %v1759_v52  ;;  %v870_v24 = vpop.f32.mrb[5].mxu1  ;;  %v815_v25 = vadd.f32 %v1435_v22, %v1759_v52  ;;  %v806_v26 = vpop.f32.mrb[5].mxu0 }
 0x178   : > { %v871_v27 = vadd.f32 %v1759_v52, %v870_v24  ;;  %v1452_v28 = vpop.f32.mrb[6].mxu1  ;;  %v807_v30 = vadd.f32 %v1759_v52, %v806_v26  ;;  %v1436_v31 = vpop.f32.mrb[6].mxu0 }
 0x179   : > { %v939_v29 = vmax.f32 %v879_v23, 0.0  ;;  %v882_v32 = vadd.f32 %v1452_v28, %v1759_v52  ;;  %v873_v33 = vpop.f32.mrb[7].mxu1  ;;  %v923_v34 = vmax.f32 %v815_v25, 0.0  ;;  %v818_v36 = vadd.f32 %v1436_v31, %v1759_v52  ;;  %v809_v37 = vpop.f32.mrb[7].mxu0 }
 0x17a   : > { %v937_v35 = vmax.f32 %v871_v27, 0.0  ;;  %v874_v38 = vadd.f32 %v1759_v52, %v873_v33  ;;  %v921_v40 = vmax.f32 %v807_v30, 0.0  ;;  %v810_v42 = vadd.f32 %v1759_v52, %v809_v37 }
 0x17b   : > { %v1394_v39 = vpack.c.bf16 %v939_v29, %v939_v29  ;;  %v940_v41 = vmax.f32 %v882_v32, 0.0  ;;  %v1378_v43 = vpack.c.bf16 %v923_v34, %v923_v34  ;;  %v924_v45 = vmax.f32 %v818_v36, 0.0 }
 0x17c   : > { %v1392_v44 = vpack.c.bf16 %v937_v35, %v937_v35  ;;  %v938_v46 = vmax.f32 %v874_v38, 0.0  ;;  %v1376_v47 = vpack.c.bf16 %v921_v40, %v921_v40  ;;  %v922_v49 = vmax.f32 %v810_v42, 0.0 }
 0x17d   : > { %1100 = vst.msk [vmem:[%s1770_s6 + $0x58] sm:$0xf] %vm1077_vm4, %v1394_v39  ;;  %v1395_v48 = vpack.c.bf16 %v940_v41, %v940_v41  ;;  %1084 = vst.msk [vmem:[%s1770_s6 + $0x18] sm:$0xf] %vm1077_vm4, %v1378_v43  ;;  %v1379_v50 = vpack.c.bf16 %v924_v45, %v924_v45 }
 0x17e   : > { %1098 = vst.msk [vmem:[%s1770_s6 + $0x50] sm:$0xf] %vm1077_vm4, %v1392_v44  ;;  %v1393_v51 = vpack.c.bf16 %v938_v46, %v938_v46  ;;  %1082 = vst.msk [vmem:[%s1770_s6 + $0x10] sm:$0xf] %vm1077_vm4, %v1376_v47  ;;  %v1377_v53 = vpack.c.bf16 %v922_v49, %v922_v49 }
 0x17f   : > { %1101 = vst.msk [vmem:[%s1770_s6 + $0x5c] sm:$0xf] %vm1077_vm4, %v1395_v48  ;;  %1085 = vst.msk [vmem:[%s1770_s6 + $0x1c] sm:$0xf] %vm1077_vm4, %v1379_v50 }
 0x180   : > { %1099 = vst.msk [vmem:[%s1770_s6 + $0x54] sm:$0xf] %vm1077_vm4, %v1393_v51  ;;  %1083 = vst.msk [vmem:[%s1770_s6 + $0x14] sm:$0xf] %vm1077_vm4, %v1377_v53 }
 0x186   : > { %v1455_v54 = vpop.f32.mrb[8].mxu1  ;;  %v1439_v55 = vpop.f32.mrb[8].mxu0 }
 0x187   : > { %v895_v56 = vadd.f32 %v1455_v54, %v1759_v52  ;;  %v886_v57 = vpop.f32.mrb[9].mxu1  ;;  %v831_v58 = vadd.f32 %v1439_v55, %v1759_v52  ;;  %v822_v59 = vpop.f32.mrb[9].mxu0 }
 0x188   : > { %v887_v60 = vadd.f32 %v1759_v52, %v886_v57  ;;  %v1456_v61 = vpop.f32.mrb[10].mxu1  ;;  %v823_v63 = vadd.f32 %v1759_v52, %v822_v59  ;;  %v1440_v0 = vpop.f32.mrb[10].mxu0 }
 0x189   : > { %v943_v62 = vmax.f32 %v895_v56, 0.0  ;;  %v898_v1 = vadd.f32 %v1456_v61, %v1759_v52  ;;  %v889_v2 = vpop.f32.mrb[11].mxu1  ;;  %v927_v3 = vmax.f32 %v831_v58, 0.0  ;;  %v834_v5 = vadd.f32 %v1440_v0, %v1759_v52  ;;  %v825_v6 = vpop.f32.mrb[11].mxu0 }
 0x18a   : > { %v941_v4 = vmax.f32 %v887_v60, 0.0  ;;  %v890_v7 = vadd.f32 %v1759_v52, %v889_v2  ;;  %v925_v9 = vmax.f32 %v823_v63, 0.0  ;;  %v826_v11 = vadd.f32 %v1759_v52, %v825_v6 }
 0x18b   : > { %v1398_v8 = vpack.c.bf16 %v943_v62, %v943_v62  ;;  %v944_v10 = vmax.f32 %v898_v1, 0.0  ;;  %v1382_v12 = vpack.c.bf16 %v927_v3, %v927_v3  ;;  %v928_v14 = vmax.f32 %v834_v5, 0.0 }
 0x18c   : > { %v1396_v13 = vpack.c.bf16 %v941_v4, %v941_v4  ;;  %v942_v15 = vmax.f32 %v890_v7, 0.0  ;;  %v1380_v16 = vpack.c.bf16 %v925_v9, %v925_v9  ;;  %v926_v18 = vmax.f32 %v826_v11, 0.0 }
 0x18d   : > { %1104 = vst.msk [vmem:[%s1770_s6 + $0x68] sm:$0xf] %vm1077_vm4, %v1398_v8  ;;  %v1399_v17 = vpack.c.bf16 %v944_v10, %v944_v10  ;;  %1088 = vst.msk [vmem:[%s1770_s6 + $0x28] sm:$0xf] %vm1077_vm4, %v1382_v12  ;;  %v1383_v19 = vpack.c.bf16 %v928_v14, %v928_v14 }
 0x18e   : > { %1102 = vst.msk [vmem:[%s1770_s6 + $0x60] sm:$0xf] %vm1077_vm4, %v1396_v13  ;;  %v1397_v20 = vpack.c.bf16 %v942_v15, %v942_v15  ;;  %1086 = vst.msk [vmem:[%s1770_s6 + $0x20] sm:$0xf] %vm1077_vm4, %v1380_v16  ;;  %v1381_v21 = vpack.c.bf16 %v926_v18, %v926_v18 }
 0x18f   : > { %1105 = vst.msk [vmem:[%s1770_s6 + $0x6c] sm:$0xf] %vm1077_vm4, %v1399_v17  ;;  %1089 = vst.msk [vmem:[%s1770_s6 + $0x2c] sm:$0xf] %vm1077_vm4, %v1383_v19 }
 0x190   : > { %1103 = vst.msk [vmem:[%s1770_s6 + $0x64] sm:$0xf] %vm1077_vm4, %v1397_v20  ;;  %1087 = vst.msk [vmem:[%s1770_s6 + $0x24] sm:$0xf] %vm1077_vm4, %v1381_v21 }
 0x196   : > { %v1459_v22 = vpop.f32.mrb[12].mxu1  ;;  %v1443_v23 = vpop.f32.mrb[12].mxu0 }
 0x197   : > { %v911_v24 = vadd.f32 %v1459_v22, %v1759_v52  ;;  %v902_v25 = vpop.f32.mrb[13].mxu1  ;;  %v847_v26 = vadd.f32 %v1443_v23, %v1759_v52  ;;  %v838_v27 = vpop.f32.mrb[13].mxu0 }
 0x198   : > { %v903_v28 = vadd.f32 %v1759_v52, %v902_v25  ;;  %v1460_v29 = vpop.f32.mrb[14].mxu1  ;;  %v839_v31 = vadd.f32 %v1759_v52, %v838_v27  ;;  %v1444_v32 = vpop.f32.mrb[14].mxu0 }
 0x199   : > { %v947_v30 = vmax.f32 %v911_v24, 0.0  ;;  %v914_v33 = vadd.f32 %v1460_v29, %v1759_v52  ;;  %v905_v34 = vpop.f32.mrb[15].mxu1  ;;  %v931_v35 = vmax.f32 %v847_v26, 0.0  ;;  %v850_v37 = vadd.f32 %v1444_v32, %v1759_v52  ;;  %v841_v38 = vpop.f32.mrb[15].mxu0 }
 0x19a   : > { %v945_v36 = vmax.f32 %v903_v28, 0.0  ;;  %v906_v39 = vadd.f32 %v1759_v52, %v905_v34  ;;  %v929_v41 = vmax.f32 %v839_v31, 0.0  ;;  %v842_v43 = vadd.f32 %v1759_v52, %v841_v38 }
 0x19b   : > { %v1402_v40 = vpack.c.bf16 %v947_v30, %v947_v30  ;;  %v948_v42 = vmax.f32 %v914_v33, 0.0  ;;  %v1386_v44 = vpack.c.bf16 %v931_v35, %v931_v35  ;;  %v932_v46 = vmax.f32 %v850_v37, 0.0 }
 0x19c   : > { %v1400_v45 = vpack.c.bf16 %v945_v36, %v945_v36  ;;  %v946_v47 = vmax.f32 %v906_v39, 0.0  ;;  %v1384_v48 = vpack.c.bf16 %v929_v41, %v929_v41  ;;  %v930_v50 = vmax.f32 %v842_v43, 0.0 }
 0x19d   : > { %1108 = vst.msk [vmem:[%s1770_s6 + $0x78] sm:$0xf] %vm1077_vm4, %v1402_v40  ;;  %v1403_v49 = vpack.c.bf16 %v948_v42, %v948_v42  ;;  %1092 = vst.msk [vmem:[%s1770_s6 + $0x38] sm:$0xf] %vm1077_vm4, %v1386_v44  ;;  %v1387_v51 = vpack.c.bf16 %v932_v46, %v932_v46 }
 0x19e   : > { %1106 = vst.msk [vmem:[%s1770_s6 + $0x70] sm:$0xf] %vm1077_vm4, %v1400_v45  ;;  %v1401_v53 = vpack.c.bf16 %v946_v47, %v946_v47  ;;  %1090 = vst.msk [vmem:[%s1770_s6 + $0x30] sm:$0xf] %vm1077_vm4, %v1384_v48  ;;  %v1385_v52 = vpack.c.bf16 %v930_v50, %v930_v50 }
 0x19f   : > { %1109 = vst.msk [vmem:[%s1770_s6 + $0x7c] sm:$0xf] %vm1077_vm4, %v1403_v49  ;;  %1093 = vst.msk [vmem:[%s1770_s6 + $0x3c] sm:$0xf] %vm1077_vm4, %v1387_v51 }
 0x1a0   : > { %1107 = vst.msk [vmem:[%s1770_s6 + $0x74] sm:$0xf] %vm1077_vm4, %v1401_v53  ;;  %1091 = vst.msk [vmem:[%s1770_s6 + $0x34] sm:$0xf] %vm1077_vm4, %v1385_v52 }
 0x1a1 PF: > { %s13_s14 = sadd.s32 1, %s1569_s14   ;;  %s1876_s12 = smov %s1565_s13 }
 0x1a2   : > { %p10_p5 = scmp.ge.s32.totalorder %s13_s14, 4   ;;  %s1877_s13 = smov %s1879_s15 }
 0x1a4   :  { %12 = sbr.rel (!%p10_p5) target bundleno = 2 (0x2), region = 65 }

</bundles_post_ra>
